<compile_context>
chip_gen: v7x
topology: tpu7x:2x2x1
jax: 0.10.0
libtpu: 0.0.40
codegen_flags: <defaults>
</compile_context>

<pallas_src>
import functools

import jax
import jax.numpy as jnp
from jax.experimental import pallas as pl
from jax.experimental.pallas import tpu as pltpu


def _cbow_kernel(tok_ref,      # (B*C,) int32 SMEM  (scalar prefetch)
                 emb_ref,      # (V, E)  f32  VMEM  (full table, grid-invariant)
                 w_ref,        # (E, TV) f32  VMEM  (fc weight tile, pre-transposed)
                 b_ref,        # (1, TV) f32  VMEM  (fc bias tile)
                 out_ref,      # (TB, TV) f32 VMEM  (logits tile)
                 x_ref,        # (TB, E) f32  VMEM scratch (summed context embeddings)
                 *, context_len: int):
    i = pl.program_id(0)                     # batch-tile index
    j = pl.program_id(1)                     # vocab-tile index
    tb, e = x_ref.shape

    # Gather + sum the context embeddings once per batch tile; the vocab axis
    # iterates sequentially ("arbitrary"), so x_ref stays valid for all j.
    @pl.when(j == 0)
    def _gather():
        def row_body(r, carry):
            base = (i * tb + r) * context_len
            acc = jnp.zeros((1, e), jnp.float32)
            for k in range(context_len):              # small & static
                t = tok_ref[base + k]                 # scalar token id from SMEM
                acc = acc + emb_ref[pl.ds(t, 1), :]   # dynamic 1-row read
            x_ref[pl.ds(r, 1), :] = acc
            return carry
        jax.lax.fori_loop(0, tb, row_body, 0)

    # Linear over this vocab tile, bias folded into the epilogue.
    out_ref[...] = (b_ref[...] +
                    jnp.dot(x_ref[...], w_ref[...],
                            preferred_element_type=jnp.float32)
                    ).astype(out_ref.dtype)


def _pick_batch_tile(B):
    cap = min(256, B // 2) if B >= 16 else B   # >=2 grid steps keeps v7x's 2nd TC busy
    for tb in (256, 128, 64, 32, 16, 8):
        if tb <= cap and B % tb == 0:
            return tb
    return B


def _pick_vocab_tile(V):
    for tv in (2048, 1024, 512, 256, 128):
        if V % tv == 0:
            return tv
    return V


def cbow_forward(tokens, emb_table, fc_w, fc_b, *, tb=None, tv=None):
    """tokens: (B, C) int; emb_table: (V, E); fc_w: (V, E) torch layout; fc_b: (V,)."""
    B, C = tokens.shape
    V, E = emb_table.shape

    tb = _pick_batch_tile(B) if tb is None else tb
    tv = _pick_vocab_tile(V) if tv is None else tv
    assert B % tb == 0 and V % tv == 0

    tok_flat = tokens.astype(jnp.int32).reshape(-1)    # 1-D -> compact SMEM footprint
    w_t = fc_w.astype(jnp.float32).T                   # (E, V) so we compute x @ W.T
    b2 = fc_b.astype(jnp.float32).reshape(1, V)

    # VMEM budget: double-buffered tiles + resident emb table + scratch, with headroom.
    est = 4 * (2 * V * E + 2 * E * tv + 2 * max(tv, 128)
               + 2 * tb * tv + tb * max(E, 128))
    vmem_limit = int(min(64 << 20, max(16 << 20, 2 * est)))

    kernel = functools.partial(_cbow_kernel, context_len=C)

    return pl.pallas_call(
        kernel,
        out_shape=jax.ShapeDtypeStruct((B, V), jnp.float32),
        grid_spec=pltpu.PrefetchScalarGridSpec(
            num_scalar_prefetch=1,                     # tokens -> SMEM
            grid=(B // tb, V // tv),
            in_specs=[
                pl.BlockSpec((V, E), lambda i, j, tok: (0, 0)),    # full emb table
                pl.BlockSpec((E, tv), lambda i, j, tok: (0, j)),   # fc weight tile
                pl.BlockSpec((1, tv), lambda i, j, tok: (0, j)),   # fc bias tile
            ],
            out_specs=pl.BlockSpec((tb, tv), lambda i, j, tok: (i, j)),
            scratch_shapes=[pltpu.VMEM((tb, E), jnp.float32)],
        ),
        compiler_params=pltpu.CompilerParams(
            dimension_semantics=("parallel", "arbitrary"),
            vmem_limit_bytes=vmem_limit,
        ),
    )(tok_flat, emb_table.astype(jnp.float32), w_t, b2)


if __name__ == "__main__":
    # Small shapes consistent with CBOW: vocab=128, embedding=32, context=4, batch=8
    n_vocab, n_embedding, context_window_len, batch = 128, 32, 4, 8

    key = jax.random.PRNGKey(0)
    k_tok, k_emb, k_w, k_b = jax.random.split(key, 4)

    tokens = jax.random.randint(k_tok, (batch, context_window_len), 0, n_vocab,
                                dtype=jnp.int32)
    emb_table = jax.random.normal(k_emb, (n_vocab, n_embedding), jnp.float32) * 0.1
    fc_w = jax.random.normal(k_w, (n_vocab, n_embedding), jnp.float32) * 0.1
    fc_b = jax.random.normal(k_b, (n_vocab,), jnp.float32) * 0.1

    out = cbow_forward(tokens, emb_table, fc_w, fc_b)
    out = jax.block_until_ready(out)

    # Pure-JAX reference (mirrors the PyTorch forward exactly).
    emb_sum_ref = jnp.sum(emb_table[tokens], axis=1)          # (B, E)
    ref = emb_sum_ref @ fc_w.T + fc_b                         # (B, V)

    assert out.shape == (batch, n_vocab)
    assert jnp.allclose(out, ref, atol=1e-5, rtol=1e-5)
    print("KERNEL_OK")
</pallas_src>

<mosaic_0001>
module attributes {stable_mosaic.version = 11 : i64} {
  func.func @_cbow_kernel(%arg0: i32, %arg1: i32, %arg2: memref<32xi32, #tpu.memory_space<smem>>, %arg3: memref<128x32xf32, #tpu.memory_space<vmem>>, %arg4: memref<32x128xf32, #tpu.memory_space<vmem>>, %arg5: memref<1x128xf32, #tpu.memory_space<vmem>>, %arg6: memref<8x128xf32, #tpu.memory_space<vmem>>, %arg7: memref<8x32xf32, #tpu.memory_space<vmem>>) attributes {dimension_semantics = [#tpu.dimension_semantics<parallel>, #tpu.dimension_semantics<arbitrary>], iteration_bounds = array<i64: 1, 1>, scalar_prefetch = 1 : i64, scratch_operands = 1 : i64, tpu.core_type = #tpu.core_type<tc>, window_params = [{pipeline_mode = #tpu.pipeline_mode<synchronous>, transform_indices = @transform_0, window_bounds = array<i64: 128, 32>}, {transform_indices = @transform_1, window_bounds = array<i64: 32, 128>}, {transform_indices = @transform_2, window_bounds = array<i64: 1, 128>}, {transform_indices = @transform_3, window_bounds = array<i64: 8, 128>}]} {
    %c0_i32 = arith.constant 0 : i32
    %0 = arith.cmpi eq, %arg1, %c0_i32 : i32
    %1 = arith.extui %0 : i1 to i32
    %c0_i32_0 = arith.constant 0 : i32
    %2 = arith.cmpi ne, %1, %c0_i32_0 : i32
    scf.if %2 {
      %c0_i32_8 = arith.constant 0 : i32
      %c8_i32 = arith.constant 8 : i32
      %10 = arith.addi %c0_i32_8, %c8_i32 : i32
      %c1_i32 = arith.constant 1 : i32
      scf.for %arg8 = %c0_i32_8 to %10 step %c1_i32  : i32 {
        %c8_i32_10 = arith.constant 8 : i32
        %11 = arith.muli %arg0, %c8_i32_10 : i32
        %12 = arith.addi %11, %arg8 : i32
        %c4_i32 = arith.constant 4 : i32
        %13 = arith.muli %12, %c4_i32 : i32
        %cst_11 = arith.constant 0.000000e+00 : f32
        %14 = vector.broadcast %cst_11 : f32 to vector<1x32xf32>
        %c0_i32_12 = arith.constant 0 : i32
        %15 = arith.addi %13, %c0_i32_12 : i32
        %16 = arith.index_cast %15 : i32 to index
        %17 = memref.load %arg2[%16] : memref<32xi32, #tpu.memory_space<smem>>
        %18 = arith.index_cast %17 : i32 to index
        %c0_13 = arith.constant 0 : index
        %19 = vector.load %arg3[%18, %c0_13] : memref<128x32xf32, #tpu.memory_space<vmem>>, vector<1x32xf32>
        %20 = arith.addf %14, %19 : vector<1x32xf32>
        %c1_i32_14 = arith.constant 1 : i32
        %21 = arith.addi %13, %c1_i32_14 : i32
        %22 = arith.index_cast %21 : i32 to index
        %23 = memref.load %arg2[%22] : memref<32xi32, #tpu.memory_space<smem>>
        %24 = arith.index_cast %23 : i32 to index
        %c0_15 = arith.constant 0 : index
        %25 = vector.load %arg3[%24, %c0_15] : memref<128x32xf32, #tpu.memory_space<vmem>>, vector<1x32xf32>
        %26 = arith.addf %20, %25 : vector<1x32xf32>
        %c2_i32 = arith.constant 2 : i32
        %27 = arith.addi %13, %c2_i32 : i32
        %28 = arith.index_cast %27 : i32 to index
        %29 = memref.load %arg2[%28] : memref<32xi32, #tpu.memory_space<smem>>
        %30 = arith.index_cast %29 : i32 to index
        %c0_16 = arith.constant 0 : index
        %31 = vector.load %arg3[%30, %c0_16] : memref<128x32xf32, #tpu.memory_space<vmem>>, vector<1x32xf32>
        %32 = arith.addf %26, %31 : vector<1x32xf32>
        %c3_i32 = arith.constant 3 : i32
        %33 = arith.addi %13, %c3_i32 : i32
        %34 = arith.index_cast %33 : i32 to index
        %35 = memref.load %arg2[%34] : memref<32xi32, #tpu.memory_space<smem>>
        %36 = arith.index_cast %35 : i32 to index
        %c0_17 = arith.constant 0 : index
        %37 = vector.load %arg3[%36, %c0_17] : memref<128x32xf32, #tpu.memory_space<vmem>>, vector<1x32xf32>
        %38 = arith.addf %32, %37 : vector<1x32xf32>
        %39 = arith.index_cast %arg8 : i32 to index
        %c0_18 = arith.constant 0 : index
        %40 = vector.load %arg7[%39, %c0_18] : memref<8x32xf32, #tpu.memory_space<vmem>>, vector<1x32xf32>
        tpu.vector_store %arg7[%39, %c0_18], %38 {strides = array<i32>} : memref<8x32xf32, #tpu.memory_space<vmem>>, vector<1x32xf32>,
      }
      %c8_i32_9 = arith.constant 8 : i32
    } else {
    }
    %c0 = arith.constant 0 : index
    %c0_1 = arith.constant 0 : index
    %3 = vector.load %arg5[%c0, %c0_1] : memref<1x128xf32, #tpu.memory_space<vmem>>, vector<1x128xf32>
    %c0_2 = arith.constant 0 : index
    %c0_3 = arith.constant 0 : index
    %4 = vector.load %arg7[%c0_2, %c0_3] : memref<8x32xf32, #tpu.memory_space<vmem>>, vector<8x32xf32>
    %c0_4 = arith.constant 0 : index
    %c0_5 = arith.constant 0 : index
    %5 = vector.load %arg4[%c0_4, %c0_5] : memref<32x128xf32, #tpu.memory_space<vmem>>, vector<32x128xf32>
    %cst = arith.constant dense<0.000000e+00> : vector<8x128xf32>
    %6 = tpu.matmul %4, %5, %cst {dimension_numbers = #tpu.dot_dimension_numbers<[1], [0], [0], [1], [0, 0, 1, 1], [], []>} : vector<8x32xf32>, vector<32x128xf32>, vector<8x128xf32> -> vector<8x128xf32>
    %7 = vector.broadcast %3 : vector<1x128xf32> to vector<8x128xf32>
    %8 = arith.addf %7, %6 : vector<8x128xf32>
    %c0_6 = arith.constant 0 : index
    %c0_7 = arith.constant 0 : index
    %9 = vector.load %arg6[%c0_6, %c0_7] : memref<8x128xf32, #tpu.memory_space<vmem>>, vector<8x128xf32>
    tpu.vector_store %arg6[%c0_6, %c0_7], %8 {strides = array<i32>} : memref<8x128xf32, #tpu.memory_space<vmem>>, vector<8x128xf32>,
    return
  }
  func.func @transform_0(%arg0: i32, %arg1: i32, %arg2: memref<32xi32, #tpu.memory_space<smem>>) -> (i32, i32) {
    %c0_i32 = arith.constant 0 : i32
    %c0_i32_0 = arith.constant 0 : i32
    %c0_i32_1 = arith.constant 0 : i32
    return %c0_i32, %c0_i32_0 : i32, i32
  }
  func.func @transform_1(%arg0: i32, %arg1: i32, %arg2: memref<32xi32, #tpu.memory_space<smem>>) -> (i32, i32) {
    %c0_i32 = arith.constant 0 : i32
    %c0_i32_0 = arith.constant 0 : i32
    return %c0_i32, %arg1 : i32, i32
  }
  func.func @transform_2(%arg0: i32, %arg1: i32, %arg2: memref<32xi32, #tpu.memory_space<smem>>) -> (i32, i32) {
    %c0_i32 = arith.constant 0 : i32
    %c0_i32_0 = arith.constant 0 : i32
    return %c0_i32, %arg1 : i32, i32
  }
  func.func @transform_3(%arg0: i32, %arg1: i32, %arg2: memref<32xi32, #tpu.memory_space<smem>>) -> (i32, i32) {
    %c0_i32 = arith.constant 0 : i32
    return %arg0, %arg1 : i32, i32
  }
}

</mosaic_0001>

<bundles_post_ra>
// kernel: tpu_custom_call.1
= control target key start
LH: loop header
LB: loop body
LE: loop exit
PB: predicated region body
PF: predicated region fallthrough
CT: control target
= control target key end

     0   :  { %s330_s0 = inlined_call_operand.vmem [shape: s32[32], index: 0, kind: input, shape index: {}]   ;;  %s331_s1 = inlined_call_operand.vmem [shape: f32[128,32], index: 1, kind: input, shape index: {}]   ;;  %s332_s2 = inlined_call_operand.vmem [shape: f32[32,128], index: 2, kind: input, shape index: {}]   ;;  %s333_s3 = inlined_call_operand.vmem [shape: f32[1,128], index: 3, kind: input, shape index: {}]   ;;  %s334_s4 = inlined_call_operand.hbm [shape: f32[8,128], index: 4, kind: output, shape index: {}]  }
   0x1   :  { %s9_s17 = sshll.u32 %s330_s0, 4  ;;  %s10_s17 = int_to_ptr.vmem [resolvable:$true] %s9_s17 }
   0x2   :  { %s207_s18 = scalar_lea.vmem %s10_s17, 16  ;;  %p212_p1 = scmp.lt.s32.totalorder %s10_s17, %s10_s17 }
   0x3   :  { %p208_p0 = scmp.ne.s32.totalorder %s10_s17, %s207_s18  ;;  %p213_p2 = scmp.lt.s32.totalorder %s207_s18, %s207_s18 }
   0x5   :  { %p214_p3 = por %p213_p2, %p212_p1 }
   0x7   :  { %p215_p4 = pnand %p214_p3, %p208_p0 }
   0x9   :  { %218 = shalt.err (!%p215_p4)  }
   0xa   :  { %s253_s19 = smov [#allocation4]  }
   0xb   :  { %12 = dma.vmem_to_smem %s10_s17, 16, %s253_s19, [#allocation3] }
   0xc   :  { %245 = dma.done.wait [#allocation3], 16 }
   0xd   :  { %246 = vsyncadd [#allocation3], 4294967280 }
   0xe   :  { %14 = sfence }
   0xf   :  { %15 = vsyncpa [#allocation6], 0  ;;  %s286_s20 = smov 0  }
  0x10 LB: > { %s169_s0 = sshll.u32 %s251_s20, 2  ;;  %vm55_vm0 = vcmask 253952   ;;  %s54_s14 = scalar_lea.vmem [#allocation2], %s251_s20  ;;  %s251_s20 = sphi %s286_s20, %s31_s20  }
  0x11   : > { %s35_s21 = sld [smem:[#allocation4 + %s169_s0]]  ;;  %s39_s22 = sadd.s32 1, %s169_s0 }
  0x12   : > { %s40_s23 = sld [smem:[#allocation4 + %s39_s22]]  ;;  %s44_s24 = sadd.s32 2, %s169_s0 }
  0x13   : > { %s45_s25 = sld [smem:[#allocation4 + %s44_s24]]  ;;  %s49_s26 = sadd.s32 3, %s169_s0 }
  0x14   : > { %s50_s27 = sld [smem:[#allocation4 + %s49_s26]]  ;;  %s31_s20 = sadd.s32 1, %s251_s20  }
  0x15   : > { %p28_p5 = scmp.ge.s32.totalorder %s31_s20, 8  }
  0x16   :  { %v59_v7 = vld [vmem:[%s332_s2] sm:$0xff] (%p28_p5)  ;;  %v60_v8 = vld [vmem:[%s332_s2 + $0x8] sm:$0xff] (%p28_p5)  ;;  %v61_v9 = vld [vmem:[%s332_s2 + $0x10] sm:$0xff] (%p28_p5)  ;;  %v254_v10 = vmov (%p28_p5), 0.0|0.0   ;;  %vm255_vm1 = vmmov (%p28_p5), 0   ;;  %v256_v13 = vmov (%p28_p5), 0.0  }
  0x17   : > { %s36_s30 = scalar_lea.vmem %s331_s1, %s35_s21  ;;  %188 = vmatprep.subr.bf16.mxu0 (%p28_p5), %v254_v10  ;;  %v189_v11 = vpack.c.bf16 (%p28_p5), %v60_v8, %v59_v7  ;;  %v62_v12 = vld [vmem:[%s332_s2 + $0x18] sm:$0xff] (%p28_p5)  ;;  %185 = vmatprep.mubr.msk.f32.mxu0 (%p28_p5), %vm255_vm1, %v256_v13  ;;  %vm63_vm2 = vcmask (%p28_p5), 261120   ;;  %v171_v16 = vld [vmem:[%s333_s3] ss:$0 sm:$0xff] (%p28_p5) }
  0x18   : > { %v37_v0 = vld [vmem:[%s36_s30] sm:$0x1]  ;;  %s41_s7 = scalar_lea.vmem %s331_s1, %s40_s23  ;;  %v192_v14 = vpack.c.bf16 (%p28_p5), %v62_v12, %v61_v9  ;;  %s257_s23 = smov (%p28_p5), [#allocation5]  }
  0x19   : > { %v42_v1 = vld [vmem:[%s41_s7] sm:$0x1]  ;;  %s46_s10 = scalar_lea.vmem %s331_s1, %s45_s25  ;;  %190 = vmatpush3.bf16.msra.mxu0 (%p28_p5), %v189_v11  ;;  %s151_s24 = sshll.u32 (%p28_p5), %s257_s23, 4  ;;  %s152_s24 = int_to_ptr.vmem [resolvable:$true] %s151_s24 }
  0x1a   : > { %v43_v2 = vadd.f32 %v42_v1, %v37_v0  ;;  %v47_v3 = vld [vmem:[%s46_s10] sm:$0x1]  ;;  %s51_s13 = scalar_lea.vmem %s331_s1, %s50_s27  ;;  %30 = sbr.rel (!%p28_p5) target bundleno = 16 (0x10), region = 48  ;;  %191 = vmatprep.subr.bf16.mxu0 (%p28_p5), %v254_v10 }
  0x1b   : > { %v52_v4 = vld [vmem:[%s51_s13] sm:$0x1]  ;;  %s219_s2 = scalar_lea.vmem (%p28_p5), %s152_s24, 128  ;;  %p224_p7 = scmp.lt.s32.totalorder (%p28_p5), %s152_s24, %s152_s24 }
  0x1c   : > { %v48_v5 = vadd.f32 %v47_v3, %v43_v2  ;;  %p220_p6 = scmp.ne.s32.totalorder (%p28_p5), %s152_s24, %s219_s2  ;;  %p225_p8 = scmp.lt.s32.totalorder (%p28_p5), %s219_s2, %s219_s2 }
  0x1d   :  { %193 = vmatpush3.bf16.msra.mxu0 (%p28_p5), %v192_v14 }
  0x1e   : > { %v53_v6 = vadd.f32 %v52_v4, %v48_v5  ;;  %p226_p9 = por (%p28_p5), %p225_p8, %p224_p7 }
  0x20   : > { %56 = vst.msk [vmem:[%s54_s14] sm:$0x1] %vm55_vm0, %v53_v6  ;;  %p227_p10 = pnand (%p28_p5), %p226_p9, %p220_p6 }
  0x27   :  { %v58_v15 = vld [vmem:[#allocation2] sm:$0xff] }
  0x28   :  { %186 = vmatmul.mubr.msk.f32.vlgmr.msra.gmra.mrb[0].mxu0 %vm63_vm2, %v58_v15 }
  0xfb   :  { %v133_v17 = vpop.f32.mrb[0].mxu0 }
  0xfc   :  { %v143_v18 = vadd.f32 %v171_v16, %v133_v17  ;;  %v187_v19 = vpop.f32.mrb[1].mxu0 }
  0xfe   :  { %144 = vst [vmem:[#allocation5] sm:$0xff] %v143_v18 }
  0xff   :  { %230 = shalt.err (!%p227_p10)
}
 0x100   :  { %s231_s27 = scalar_lea.hbm %s334_s4, 128 }
 0x101   :  { %p232_p11 = scmp.ne.s32.totalorder %s334_s4, %s231_s27  ;;  %p235_p12 = scmp.lt.u32.totalorder %s231_s27, %s334_s4 }
 0x103   :  { %p237_p13 = pnand %p235_p12, %p232_p11 }
 0x105   :  { %240 = shalt.err (!%p237_p13)
}
 0x106   :  { %154 = dma.vmem_to_hbm [thread:$0]  %s152_s24, 128, %s334_s4, [#allocation6]  }
 0x107   :  { %247 = dma.done.wait [#allocation6], 128  }
 0x108   :  { %248 = vsyncadd [#allocation6], 4294967168 }
 0x109   :  { %158 = vsyncpa [#allocation6], 1 }

</bundles_post_ra>
